<compile_context>
chip_gen: v7x
topology: tpu7x:2x2x1
jax: 0.10.0
libtpu: 0.0.40
codegen_flags: <defaults>
</compile_context>

<pallas_src>
import functools

import jax
import jax.numpy as jnp
from jax import lax
from jax.experimental import pallas as pl
from jax.experimental.pallas import tpu as pltpu


# ------------------------- Fused Pallas kernel -------------------------

def _fused_mha_kernel(
    xq_ref, xk_ref, xv_ref,           # (S, Eq) query block / (M, Ek) / (M, Ev)
    wq_ref, wk_ref, wv_ref, wo_ref,   # full weights
    o_ref,                            # (S, H) output block for this grid step
    *, seq, num_heads, use_bf16,
):
    f32 = jnp.float32
    mm_dtype = jnp.bfloat16 if use_bf16 else f32

    def mm(a, b):
        # MXU matmul; bf16 operands (native MXU path) with f32 accumulation
        # when use_bf16 is set, plain f32 otherwise.
        return jnp.dot(a.astype(mm_dtype), b.astype(mm_dtype),
                       preferred_element_type=f32)

    # ---- Q/K/V projections.  This grid step projects only its own query
    # rows; keys/values are projected in full (attention mixes all batches).
    q2d = mm(xq_ref[...], wq_ref[...])            # (S, H)
    k2d = mm(xk_ref[...], wk_ref[...])            # (M, H)
    v2d = mm(xv_ref[...], wv_ref[...])            # (M, H)

    hidden = q2d.shape[1]
    dh = hidden // num_heads

    # ---- Head split (transpose_qkv fused): one lane extraction per head,
    # hoisted out of any per-batch loop, concatenated along sublanes into a
    # vreg-resident value (no VMEM scratch, no store/reload).
    def split_heads(x2d):
        return jnp.concatenate(
            [x2d[:, h * dh:(h + 1) * dh] for h in range(num_heads)], axis=0)

    qh = split_heads(q2d)                         # (num_heads*S, dh)
    kh = split_heads(k2d)                         # (num_heads*M, dh)
    vh = split_heads(v2d)                         # (num_heads*M, dh)

    nq = qh.shape[0]
    nk = kh.shape[0]

    # ---- DiffAttention: every (batch, head) pair attends to every other
    # (batch, head) pair at the SAME sequence position.  One lane-dense MXU
    # matmul over all rows; entries with mismatched positions are masked out
    # after the (saturating) sigmoid.
    scores = lax.dot_general(qh.astype(mm_dtype), kh.astype(mm_dtype),
                             (((1,), (1,)), ((), ())),
                             preferred_element_type=f32)      # (nq, nk)

    # Same-position mask from 1-D iotas + broadcasting compare (O(n) mod work,
    # no (nq, nk) int32 temporaries).  Row/col index % seq recovers the seq
    # position because every head/batch group spans a multiple of `seq` rows.
    rpos = lax.broadcasted_iota(jnp.int32, (nq, 1), 0) % seq
    cpos = lax.broadcasted_iota(jnp.int32, (1, nk), 1) % seq
    same_pos = rpos == cpos                                    # (nq, nk)

    attn_num = jnp.where(same_pos, jax.nn.sigmoid(scores), 0.0)
    denom = jnp.sum(attn_num, axis=1, keepdims=True)           # (nq, 1)
    inv = pl.reciprocal(denom, approx=True)                    # EUP slot
    inv = inv * (2.0 - denom * inv)                            # Newton: ~f32-exact
    # TODO(synk): dropout on the attention weights is the identity (eval / p=0).
    attn = attn_num * inv

    ctx = jnp.dot(attn.astype(mm_dtype), vh.astype(mm_dtype),
                  preferred_element_type=f32)                  # (nq, dh)

    # ---- Output projection folded per head (transpose_output eliminated):
    # out[s, :] = sum_h ctx[h*S + s, :] @ W_o[h*dh:(h+1)*dh, :].
    # f32 accumulation in vregs, single lane-dense store at the end.
    wo = wo_ref[...]
    out = None
    for h in range(num_heads):
        part = jnp.dot(ctx[h * seq:(h + 1) * seq, :].astype(mm_dtype),
                       wo[h * dh:(h + 1) * dh, :].astype(mm_dtype),
                       preferred_element_type=f32)             # (S, H)
        out = part if out is None else out + part
    o_ref[...] = out.astype(o_ref.dtype)


def multi_head_attention(queries, keys, values, params, num_heads,
                         *, use_bf16_matmul=True):
    B, S, Eq = queries.shape
    Ek = keys.shape[2]
    Ev = values.shape[2]
    H = params["W_q"].shape[1]
    M = B * S
    dh = H // num_heads
    NS = B * num_heads * S

    kernel = functools.partial(_fused_mha_kernel, seq=S, num_heads=num_heads,
                               use_bf16=use_bf16_matmul)

    # Advisory cost hint for the XLA scheduler around the custom call.
    flops = (2 * M * Eq * H                     # Q projection (sharded over grid)
             + 2 * B * M * (Ek + Ev) * H        # K/V projections (per grid step)
             + 4 * NS * NS * dh                 # scores + attn @ V
             + 2 * M * H * H)                   # W_o
    transcendentals = NS * NS + NS              # sigmoid + reciprocal
    bytes_accessed = 4 * (M * Eq + B * M * (Ek + Ev)
                          + B * ((Eq + Ek + Ev) * H + H * H) + M * H)

    out2d = pl.pallas_call(
        kernel,
        out_shape=jax.ShapeDtypeStruct((M, H), queries.dtype),
        grid=(B,),
        in_specs=[
            pl.BlockSpec((S, Eq), lambda b: (b, 0)),   # this step's query rows
            pl.BlockSpec((M, Ek), lambda b: (0, 0)),   # full keys
            pl.BlockSpec((M, Ev), lambda b: (0, 0)),   # full values
            pl.BlockSpec((Eq, H), lambda b: (0, 0)),
            pl.BlockSpec((Ek, H), lambda b: (0, 0)),
            pl.BlockSpec((Ev, H), lambda b: (0, 0)),
            pl.BlockSpec((H, H), lambda b: (0, 0)),
        ],
        out_specs=pl.BlockSpec((S, H), lambda b: (b, 0)),
        compiler_params=pltpu.CompilerParams(
            dimension_semantics=("parallel",),          # 2nd TC on v7x
            vmem_limit_bytes=32 * 1024 * 1024),
        cost_estimate=pl.CostEstimate(
            flops=flops, transcendentals=transcendentals,
            bytes_accessed=bytes_accessed),
    )(
        queries.reshape(M, Eq), keys.reshape(M, Ek), values.reshape(M, Ev),
        params["W_q"], params["W_k"], params["W_v"], params["W_o"],
    )
    return out2d.reshape(B, S, H)


# ------------------------- Pure-JAX reference -------------------------

def transpose_qkv(X, num_heads):
    B, S, H = X.shape
    X = X.reshape(B, S, num_heads, H // num_heads)
    X = jnp.transpose(X, (0, 2, 1, 3))
    return X.reshape(B * num_heads, S, H // num_heads)


def transpose_output(X, num_heads):
    N, S, Dh = X.shape
    B = N // num_heads
    X = X.reshape(B, num_heads, S, Dh)
    X = jnp.transpose(X, (0, 2, 1, 3))
    return X.reshape(B, S, num_heads * Dh)


def reference(queries, keys, values, params, num_heads):
    # Mirrors the PyTorch forward (DiffAttention semantics).
    q = transpose_qkv(queries @ params["W_q"], num_heads)
    k = transpose_qkv(keys @ params["W_k"], num_heads)
    v = transpose_qkv(values @ params["W_v"], num_heads)
    attn_num = jax.nn.sigmoid(jnp.einsum("nhm,lhm->nlh", q, k))
    normalizer = jnp.einsum("nlh->nh", attn_num)[:, None, :]
    attn = attn_num / normalizer
    out = jnp.einsum("nlh,lhd->nhd", attn, v)
    return transpose_output(out, num_heads) @ params["W_o"]


if __name__ == "__main__":
    B, S = 2, 8
    query_size = key_size = value_size = 32
    num_hiddens = 32
    num_heads = 4

    root = jax.random.PRNGKey(0)
    kq, kk, kv, kwq, kwk, kwv, kwo = jax.random.split(root, 7)

    queries = jax.random.normal(kq, (B, S, query_size), dtype=jnp.float32)
    keys_in = jax.random.normal(kk, (B, S, key_size), dtype=jnp.float32)
    values = jax.random.normal(kv, (B, S, value_size), dtype=jnp.float32)

    # Deterministic weights, stored as (in, out); PyTorch Linear has bias=False.
    params = {
        "W_q": 0.1 * jax.random.normal(kwq, (query_size, num_hiddens), jnp.float32),
        "W_k": 0.1 * jax.random.normal(kwk, (key_size, num_hiddens), jnp.float32),
        "W_v": 0.1 * jax.random.normal(kwv, (value_size, num_hiddens), jnp.float32),
        "W_o": 0.1 * jax.random.normal(kwo, (num_hiddens, num_hiddens), jnp.float32),
    }

    ref = reference(queries, keys_in, values, params, num_heads)

    # Exact path: f32 MXU operands + Newton-corrected reciprocal -> tight check.
    out_f32 = jax.block_until_ready(
        multi_head_attention(queries, keys_in, values, params, num_heads,
                             use_bf16_matmul=False))
    assert out_f32.shape == (B, S, num_hiddens)
    assert jnp.allclose(out_f32, ref, atol=1e-3, rtol=1e-3)

    # Throughput path (perf review): bf16 MXU operands, f32 accumulation,
    # sigmoid / normalizer math kept in f32.
    out_bf16 = jax.block_until_ready(
        multi_head_attention(queries, keys_in, values, params, num_heads,
                             use_bf16_matmul=True))
    assert out_bf16.shape == (B, S, num_hiddens)
    assert jnp.allclose(out_bf16, ref, atol=2e-2, rtol=2e-2)

    print("KERNEL_OK")
</pallas_src>

<mosaic_0001>
module attributes {stable_mosaic.version = 11 : i64} {
  func.func @_fused_mha_kernel(%arg0: i32, %arg1: memref<8x32xf32, #tpu.memory_space<vmem>>, %arg2: memref<16x32xf32, #tpu.memory_space<vmem>>, %arg3: memref<16x32xf32, #tpu.memory_space<vmem>>, %arg4: memref<32x32xf32, #tpu.memory_space<vmem>>, %arg5: memref<32x32xf32, #tpu.memory_space<vmem>>, %arg6: memref<32x32xf32, #tpu.memory_space<vmem>>, %arg7: memref<32x32xf32, #tpu.memory_space<vmem>>, %arg8: memref<8x32xf32, #tpu.memory_space<vmem>>) attributes {dimension_semantics = [#tpu.dimension_semantics<parallel>], iteration_bounds = array<i64: 2>, scalar_prefetch = 0 : i64, scratch_operands = 0 : i64, tpu.core_type = #tpu.core_type<tc>, window_params = [{transform_indices = @transform_0, window_bounds = array<i64: 8, 32>}, {pipeline_mode = #tpu.pipeline_mode<synchronous>, transform_indices = @transform_1, window_bounds = array<i64: 16, 32>}, {pipeline_mode = #tpu.pipeline_mode<synchronous>, transform_indices = @transform_2, window_bounds = array<i64: 16, 32>}, {pipeline_mode = #tpu.pipeline_mode<synchronous>, transform_indices = @transform_3, window_bounds = array<i64: 32, 32>}, {pipeline_mode = #tpu.pipeline_mode<synchronous>, transform_indices = @transform_4, window_bounds = array<i64: 32, 32>}, {pipeline_mode = #tpu.pipeline_mode<synchronous>, transform_indices = @transform_5, window_bounds = array<i64: 32, 32>}, {pipeline_mode = #tpu.pipeline_mode<synchronous>, transform_indices = @transform_6, window_bounds = array<i64: 32, 32>}, {transform_indices = @transform_7, window_bounds = array<i64: 8, 32>}]} {
    %c0 = arith.constant 0 : index
    %c0_0 = arith.constant 0 : index
    %0 = vector.load %arg1[%c0, %c0_0] : memref<8x32xf32, #tpu.memory_space<vmem>>, vector<8x32xf32>
    %c0_1 = arith.constant 0 : index
    %c0_2 = arith.constant 0 : index
    %1 = vector.load %arg4[%c0_1, %c0_2] : memref<32x32xf32, #tpu.memory_space<vmem>>, vector<32x32xf32>
    %cst = arith.constant dense<0.000000e+00> : vector<8x32xf32>
    %2 = tpu.matmul %0, %1, %cst {dimension_numbers = #tpu.dot_dimension_numbers<[1], [0], [0], [1], [0, 0, 1, 1], [], []>} : vector<8x32xf32>, vector<32x32xf32>, vector<8x32xf32> -> vector<8x32xf32>
    %c0_3 = arith.constant 0 : index
    %c0_4 = arith.constant 0 : index
    %3 = vector.load %arg2[%c0_3, %c0_4] : memref<16x32xf32, #tpu.memory_space<vmem>>, vector<16x32xf32>
    %c0_5 = arith.constant 0 : index
    %c0_6 = arith.constant 0 : index
    %4 = vector.load %arg5[%c0_5, %c0_6] : memref<32x32xf32, #tpu.memory_space<vmem>>, vector<32x32xf32>
    %cst_7 = arith.constant dense<0.000000e+00> : vector<16x32xf32>
    %5 = tpu.matmul %3, %4, %cst_7 {dimension_numbers = #tpu.dot_dimension_numbers<[1], [0], [0], [1], [0, 0, 1, 1], [], []>} : vector<16x32xf32>, vector<32x32xf32>, vector<16x32xf32> -> vector<16x32xf32>
    %c0_8 = arith.constant 0 : index
    %c0_9 = arith.constant 0 : index
    %6 = vector.load %arg3[%c0_8, %c0_9] : memref<16x32xf32, #tpu.memory_space<vmem>>, vector<16x32xf32>
    %c0_10 = arith.constant 0 : index
    %c0_11 = arith.constant 0 : index
    %7 = vector.load %arg6[%c0_10, %c0_11] : memref<32x32xf32, #tpu.memory_space<vmem>>, vector<32x32xf32>
    %cst_12 = arith.constant dense<0.000000e+00> : vector<16x32xf32>
    %8 = tpu.matmul %6, %7, %cst_12 {dimension_numbers = #tpu.dot_dimension_numbers<[1], [0], [0], [1], [0, 0, 1, 1], [], []>} : vector<16x32xf32>, vector<32x32xf32>, vector<16x32xf32> -> vector<16x32xf32>
    %9 = vector.extract_strided_slice %2 {offsets = [0, 0], sizes = [8, 8], strides = [1, 1]} : vector<8x32xf32> to vector<8x8xf32>
    %10 = vector.extract_strided_slice %2 {offsets = [0, 8], sizes = [8, 8], strides = [1, 1]} : vector<8x32xf32> to vector<8x8xf32>
    %11 = vector.extract_strided_slice %2 {offsets = [0, 16], sizes = [8, 8], strides = [1, 1]} : vector<8x32xf32> to vector<8x8xf32>
    %12 = vector.extract_strided_slice %2 {offsets = [0, 24], sizes = [8, 8], strides = [1, 1]} : vector<8x32xf32> to vector<8x8xf32>
    %13 = tpu.concatenate %9, %10, %11, %12 in 0 : vector<8x8xf32>, vector<8x8xf32>, vector<8x8xf32>, vector<8x8xf32> -> vector<32x8xf32>
    %14 = vector.extract_strided_slice %5 {offsets = [0, 0], sizes = [16, 8], strides = [1, 1]} : vector<16x32xf32> to vector<16x8xf32>
    %15 = vector.extract_strided_slice %5 {offsets = [0, 8], sizes = [16, 8], strides = [1, 1]} : vector<16x32xf32> to vector<16x8xf32>
    %16 = vector.extract_strided_slice %5 {offsets = [0, 16], sizes = [16, 8], strides = [1, 1]} : vector<16x32xf32> to vector<16x8xf32>
    %17 = vector.extract_strided_slice %5 {offsets = [0, 24], sizes = [16, 8], strides = [1, 1]} : vector<16x32xf32> to vector<16x8xf32>
    %18 = tpu.concatenate %14, %15, %16, %17 in 0 : vector<16x8xf32>, vector<16x8xf32>, vector<16x8xf32>, vector<16x8xf32> -> vector<64x8xf32>
    %19 = vector.extract_strided_slice %8 {offsets = [0, 0], sizes = [16, 8], strides = [1, 1]} : vector<16x32xf32> to vector<16x8xf32>
    %20 = vector.extract_strided_slice %8 {offsets = [0, 8], sizes = [16, 8], strides = [1, 1]} : vector<16x32xf32> to vector<16x8xf32>
    %21 = vector.extract_strided_slice %8 {offsets = [0, 16], sizes = [16, 8], strides = [1, 1]} : vector<16x32xf32> to vector<16x8xf32>
    %22 = vector.extract_strided_slice %8 {offsets = [0, 24], sizes = [16, 8], strides = [1, 1]} : vector<16x32xf32> to vector<16x8xf32>
    %23 = tpu.concatenate %19, %20, %21, %22 in 0 : vector<16x8xf32>, vector<16x8xf32>, vector<16x8xf32>, vector<16x8xf32> -> vector<64x8xf32>
    %cst_13 = arith.constant dense<0.000000e+00> : vector<32x64xf32>
    %24 = tpu.matmul %13, %18, %cst_13 {dimension_numbers = #tpu.dot_dimension_numbers<[1], [1], [0], [0], [0, 0, 1, 0], [], []>} : vector<32x8xf32>, vector<64x8xf32>, vector<32x64xf32> -> vector<32x64xf32>
    %25 = tpu.iota {dimensions = array<i32: 0>} : vector<32x1xi32>
    %c8_i32 = arith.constant 8 : i32
    %c0_i32 = arith.constant 0 : i32
    %26 = arith.cmpi eq, %c8_i32, %c0_i32 : i32
    %c1_i32 = arith.constant 1 : i32
    %27 = arith.select %26, %c1_i32, %c8_i32 : i32
    %28 = vector.broadcast %27 : i32 to vector<32x1xi32>
    %29 = arith.remsi %25, %28 : vector<32x1xi32>
    %c0_i32_14 = arith.constant 0 : i32
    %30 = vector.broadcast %c0_i32_14 : i32 to vector<32x1xi32>
    %31 = arith.cmpi ne, %29, %30 : vector<32x1xi32>
    %c0_i32_15 = arith.constant 0 : i32
    %32 = vector.broadcast %c0_i32_15 : i32 to vector<32x1xi32>
    %33 = arith.cmpi slt, %29, %32 : vector<32x1xi32>
    %c0_i32_16 = arith.constant 0 : i32
    %34 = arith.cmpi slt, %27, %c0_i32_16 : i32
    %35 = vector.broadcast %34 : i1 to vector<32x1xi1>
    %36 = vector.broadcast %35 : vector<32x1xi1> to vector<32x1xi1>
    %37 = arith.xori %33, %36 : vector<32x1xi1>
    %38 = arith.andi %37, %31 : vector<32x1xi1>
    %39 = vector.broadcast %27 : i32 to vector<32x1xi32>
    %40 = arith.addi %29, %39 : vector<32x1xi32>
    %41 = arith.select %38, %40, %29 : vector<32x1xi1>, vector<32x1xi32>
    %42 = tpu.iota {dimensions = array<i32: 1>} : vector<1x64xi32>
    %c8_i32_17 = arith.constant 8 : i32
    %c0_i32_18 = arith.constant 0 : i32
    %43 = arith.cmpi eq, %c8_i32_17, %c0_i32_18 : i32
    %c1_i32_19 = arith.constant 1 : i32
    %44 = arith.select %43, %c1_i32_19, %c8_i32_17 : i32
    %45 = vector.broadcast %44 : i32 to vector<1x64xi32>
    %46 = arith.remsi %42, %45 : vector<1x64xi32>
    %c0_i32_20 = arith.constant 0 : i32
    %47 = vector.broadcast %c0_i32_20 : i32 to vector<1x64xi32>
    %48 = arith.cmpi ne, %46, %47 : vector<1x64xi32>
    %c0_i32_21 = arith.constant 0 : i32
    %49 = vector.broadcast %c0_i32_21 : i32 to vector<1x64xi32>
    %50 = arith.cmpi slt, %46, %49 : vector<1x64xi32>
    %c0_i32_22 = arith.constant 0 : i32
    %51 = arith.cmpi slt, %44, %c0_i32_22 : i32
    %52 = vector.broadcast %51 : i1 to vector<1x64xi1>
    %53 = vector.broadcast %52 : vector<1x64xi1> to vector<1x64xi1>
    %54 = arith.xori %50, %53 : vector<1x64xi1>
    %55 = arith.andi %54, %48 : vector<1x64xi1>
    %56 = vector.broadcast %44 : i32 to vector<1x64xi32>
    %57 = arith.addi %46, %56 : vector<1x64xi32>
    %58 = arith.select %55, %57, %46 : vector<1x64xi1>, vector<1x64xi32>
    %59 = vector.broadcast %41 : vector<32x1xi32> to vector<32x64xi32>
    %60 = vector.broadcast %58 : vector<1x64xi32> to vector<32x64xi32>
    %61 = arith.cmpi eq, %59, %60 : vector<32x64xi32>
    %62 = arith.negf %24 : vector<32x64xf32>
    %63 = math.exp %62 : vector<32x64xf32>
    %cst_23 = arith.constant 1.000000e+00 : f32
    %64 = vector.broadcast %cst_23 : f32 to vector<32x64xf32>
    %65 = arith.addf %64, %63 : vector<32x64xf32>
    %66 = arith.divf %64, %65 : vector<32x64xf32>
    %cst_24 = arith.constant 0.000000e+00 : f32
    %67 = vector.broadcast %cst_24 : f32 to vector<32x64xf32>
    %68 = arith.select %61, %66, %67 : vector<32x64xi1>, vector<32x64xf32>
    %cst_25 = arith.constant dense<0.000000e+00> : vector<32xf32>
    %69 = vector.multi_reduction <add>, %68, %cst_25 [1] : vector<32x64xf32> to vector<32xf32>
    %70 = vector.shape_cast %69 : vector<32xf32> to vector<32x1xf32>
    %71 = tpu.reciprocal %70 {approx = true} : vector<32x1xf32> -> vector<32x1xf32>
    %72 = arith.mulf %70, %71 : vector<32x1xf32>
    %cst_26 = arith.constant 2.000000e+00 : f32
    %73 = vector.broadcast %cst_26 : f32 to vector<32x1xf32>
    %74 = arith.subf %73, %72 : vector<32x1xf32>
    %75 = arith.mulf %71, %74 : vector<32x1xf32>
    %76 = vector.broadcast %75 : vector<32x1xf32> to vector<32x64xf32>
    %77 = arith.mulf %68, %76 : vector<32x64xf32>
    %cst_27 = arith.constant dense<0.000000e+00> : vector<32x8xf32>
    %78 = tpu.matmul %77, %23, %cst_27 {dimension_numbers = #tpu.dot_dimension_numbers<[1], [0], [0], [1], [0, 0, 1, 1], [], []>} : vector<32x64xf32>, vector<64x8xf32>, vector<32x8xf32> -> vector<32x8xf32>
    %c0_28 = arith.constant 0 : index
    %c0_29 = arith.constant 0 : index
    %79 = vector.load %arg7[%c0_28, %c0_29] : memref<32x32xf32, #tpu.memory_space<vmem>>, vector<32x32xf32>
    %80 = vector.extract_strided_slice %78 {offsets = [0, 0], sizes = [8, 8], strides = [1, 1]} : vector<32x8xf32> to vector<8x8xf32>
    %81 = vector.extract_strided_slice %79 {offsets = [0, 0], sizes = [8, 32], strides = [1, 1]} : vector<32x32xf32> to vector<8x32xf32>
    %cst_30 = arith.constant dense<0.000000e+00> : vector<8x32xf32>
    %82 = tpu.matmul %80, %81, %cst_30 {dimension_numbers = #tpu.dot_dimension_numbers<[1], [0], [0], [1], [0, 0, 1, 1], [], []>} : vector<8x8xf32>, vector<8x32xf32>, vector<8x32xf32> -> vector<8x32xf32>
    %83 = vector.extract_strided_slice %78 {offsets = [8, 0], sizes = [8, 8], strides = [1, 1]} : vector<32x8xf32> to vector<8x8xf32>
    %84 = vector.extract_strided_slice %79 {offsets = [8, 0], sizes = [8, 32], strides = [1, 1]} : vector<32x32xf32> to vector<8x32xf32>
    %cst_31 = arith.constant dense<0.000000e+00> : vector<8x32xf32>
    %85 = tpu.matmul %83, %84, %cst_31 {dimension_numbers = #tpu.dot_dimension_numbers<[1], [0], [0], [1], [0, 0, 1, 1], [], []>} : vector<8x8xf32>, vector<8x32xf32>, vector<8x32xf32> -> vector<8x32xf32>
    %86 = arith.addf %82, %85 : vector<8x32xf32>
    %87 = vector.extract_strided_slice %78 {offsets = [16, 0], sizes = [8, 8], strides = [1, 1]} : vector<32x8xf32> to vector<8x8xf32>
    %88 = vector.extract_strided_slice %79 {offsets = [16, 0], sizes = [8, 32], strides = [1, 1]} : vector<32x32xf32> to vector<8x32xf32>
    %cst_32 = arith.constant dense<0.000000e+00> : vector<8x32xf32>
    %89 = tpu.matmul %87, %88, %cst_32 {dimension_numbers = #tpu.dot_dimension_numbers<[1], [0], [0], [1], [0, 0, 1, 1], [], []>} : vector<8x8xf32>, vector<8x32xf32>, vector<8x32xf32> -> vector<8x32xf32>
    %90 = arith.addf %86, %89 : vector<8x32xf32>
    %91 = vector.extract_strided_slice %78 {offsets = [24, 0], sizes = [8, 8], strides = [1, 1]} : vector<32x8xf32> to vector<8x8xf32>
    %92 = vector.extract_strided_slice %79 {offsets = [24, 0], sizes = [8, 32], strides = [1, 1]} : vector<32x32xf32> to vector<8x32xf32>
    %cst_33 = arith.constant dense<0.000000e+00> : vector<8x32xf32>
    %93 = tpu.matmul %91, %92, %cst_33 {dimension_numbers = #tpu.dot_dimension_numbers<[1], [0], [0], [1], [0, 0, 1, 1], [], []>} : vector<8x8xf32>, vector<8x32xf32>, vector<8x32xf32> -> vector<8x32xf32>
    %94 = arith.addf %90, %93 : vector<8x32xf32>
    %c0_34 = arith.constant 0 : index
    %c0_35 = arith.constant 0 : index
    %95 = vector.load %arg8[%c0_34, %c0_35] : memref<8x32xf32, #tpu.memory_space<vmem>>, vector<8x32xf32>
    tpu.vector_store %arg8[%c0_34, %c0_35], %94 {strides = array<i32>} : memref<8x32xf32, #tpu.memory_space<vmem>>, vector<8x32xf32>,
    return
  }
  func.func @transform_0(%arg0: i32) -> (i32, i32) {
    %c0_i32 = arith.constant 0 : i32
    %c0_i32_0 = arith.constant 0 : i32
    return %arg0, %c0_i32 : i32, i32
  }
  func.func @transform_1(%arg0: i32) -> (i32, i32) {
    %c0_i32 = arith.constant 0 : i32
    %c0_i32_0 = arith.constant 0 : i32
    %c0_i32_1 = arith.constant 0 : i32
    return %c0_i32, %c0_i32_0 : i32, i32
  }
  func.func @transform_2(%arg0: i32) -> (i32, i32) {
    %c0_i32 = arith.constant 0 : i32
    %c0_i32_0 = arith.constant 0 : i32
    %c0_i32_1 = arith.constant 0 : i32
    return %c0_i32, %c0_i32_0 : i32, i32
  }
  func.func @transform_3(%arg0: i32) -> (i32, i32) {
    %c0_i32 = arith.constant 0 : i32
    %c0_i32_0 = arith.constant 0 : i32
    %c0_i32_1 = arith.constant 0 : i32
    return %c0_i32, %c0_i32_0 : i32, i32
  }
  func.func @transform_4(%arg0: i32) -> (i32, i32) {
    %c0_i32 = arith.constant 0 : i32
    %c0_i32_0 = arith.constant 0 : i32
    %c0_i32_1 = arith.constant 0 : i32
    return %c0_i32, %c0_i32_0 : i32, i32
  }
  func.func @transform_5(%arg0: i32) -> (i32, i32) {
    %c0_i32 = arith.constant 0 : i32
    %c0_i32_0 = arith.constant 0 : i32
    %c0_i32_1 = arith.constant 0 : i32
    return %c0_i32, %c0_i32_0 : i32, i32
  }
  func.func @transform_6(%arg0: i32) -> (i32, i32) {
    %c0_i32 = arith.constant 0 : i32
    %c0_i32_0 = arith.constant 0 : i32
    %c0_i32_1 = arith.constant 0 : i32
    return %c0_i32, %c0_i32_0 : i32, i32
  }
  func.func @transform_7(%arg0: i32) -> (i32, i32) {
    %c0_i32 = arith.constant 0 : i32
    %c0_i32_0 = arith.constant 0 : i32
    return %arg0, %c0_i32 : i32, i32
  }
}

</mosaic_0001>

<bundles_post_ra>
// kernel: tpu_custom_call.1
= control target key start
LH: loop header
LB: loop body
LE: loop exit
PB: predicated region body
PF: predicated region fallthrough
CT: control target
= control target key end

     0   :  { %12 = vsyncpa [#allocation3], 0  ;;  %s2640_s0 = inlined_call_operand.hbm [shape: f32[16,32], index: 0, kind: input, shape index: {}]   ;;  %s2641_s1 = inlined_call_operand.hbm [shape: f32[16,32], index: 1, kind: input, shape index: {}]   ;;  %s2642_s2 = inlined_call_operand.hbm [shape: f32[16,32], index: 2, kind: input, shape index: {}]   ;;  %s2643_s3 = inlined_call_operand.hbm [shape: f32[32,32], index: 3, kind: input, shape index: {}]   ;;  %s2644_s4 = inlined_call_operand.hbm [shape: f32[32,32], index: 4, kind: input, shape index: {}]   ;;  %s2645_s5 = inlined_call_operand.hbm [shape: f32[32,32], index: 5, kind: input, shape index: {}]   ;;  %s2646_s6 = inlined_call_operand.hbm [shape: f32[32,32], index: 6, kind: input, shape index: {}]   ;;  %s2647_s7 = inlined_call_operand.hbm [shape: f32[16,32], index: 7, kind: output, shape index: {}]  }
   0x1   :  { %14 = vsyncpa [#allocation3 + $0x1], 0 }
   0x2   :  { %15 = vsyncpa [#allocation6], 0 }
   0x3   :  { %16 = vsyncpa [#allocation9], 0 }
   0x4   :  { %17 = vsyncpa [#allocation12], 0 }
   0x5   :  { %18 = vsyncpa [#allocation4], 0 }
   0x6   :  { %20 = vsyncpa [#allocation4 + $0x1], 0  ;;  %s2223_s24 = smov 0   ;;  %s2225_s25 = smov 0  }
   0x7   :  { %s2227_s26 = smov 0   ;;  %s2229_s27 = smov 0  }
   0x8 LB: > { %s2167_s28 = smov [#allocation5]   ;;  %s2244_s30 = sadd.s32 4294967295, %s2165_s27   ;;  %s2165_s27 = sphi %s2229_s27, %s2675_s27   ;;  %s2161_s26 = sphi %s2227_s26, %s2674_s26   ;;  %s2157_s25 = sphi %s2225_s25, %s2673_s25   ;;  %s2153_s24 = sphi %s2223_s24, %s2672_s24  }
   0x9   : > { %s221_s29 = sshll.u32 %s2167_s28, 4  ;;  %p1455_p0 = scmp.ge.s32.totalorder %s2165_s27, 1  ;;  %s2249_s29 = int_to_ptr.vmem [resolvable:$true] %s221_s29 }
   0xa   : > { %p2648_p1 = scmp.eq.s32.totalorder %s2244_s30, 0  ;;  %p209_p2 = scmp.lt.s32.totalorder %s2165_s27, 3 }
   0xb   : > { %s2168_s9 = smov [#allocation8]   ;;  %s2169_s12 = smov [#allocation11]  }
   0xc   : > { %p2251_p3 = pnand %p1455_p0, %p209_p2  ;;  %s247_s10 = sshll.u32 %s2168_s9, 4  ;;  %s2264_s10 = int_to_ptr.vmem [resolvable:$true] %s247_s10 }
   0xd   : > { %s273_s13 = sshll.u32 %s2169_s12, 4  ;;  %s1889_s16 = scalar_lea.hbm %s2641_s1, 256  ;;  %s2266_s13 = int_to_ptr.vmem [resolvable:$true] %s273_s13 }
   0xe   : > { %s2651_s8 = scalar_select %p2251_p3, 1, 0 }
   0xf   : > { %p1748_p5 = pneg %p2251_p3  ;;  %p1890_p7 = scmp.ne.s32.totalorder %s2641_s1, %s1889_s16 }
  0x10   : > { %p1896_p11 = scmp.lt.u32.totalorder %s1889_s16, %s2641_s1 }
  0x11   : > { %p2260_p6 = pnand %p1748_p5, %p2648_p1 }
  0x13   : > { %p2276_p8 = pneg %p2260_p6 }
  0x15   : > { %p1892_p9 = pnand %p2276_p8, %p1890_p7 }
  0x17   : > { %p1893_p10 = pneg %p1892_p9 }
  0x19   : > { %p1898_p12 = pnand %p1896_p11, %p1893_p10 }
  0x1b   : > { %1901 = shalt.err (!%p1898_p12)
}
  0x1c   : > { %s1902_s22 = scalar_lea.vmem %s2249_s29, 256  ;;  %p1910_p5 = scmp.lt.s32.totalorder %s2249_s29, %s2249_s29 }
  0x1d   : > { %p1903_p13 = scmp.ne.s32.totalorder %s2249_s29, %s1902_s22  ;;  %p1911_p4 = scmp.lt.s32.totalorder %s1902_s22, %s1902_s22 }
  0x1f   : > { %p1905_p0 = pnand %p1903_p13, %p2276_p8  ;;  %p1912_p7 = por %p1911_p4, %p1910_p5 }
  0x21   : > { %p1906_p2 = pneg %p1905_p0 }
  0x23   : > { %p1913_p9 = pnand %p1912_p7, %p1906_p2 }
  0x25   : > { %1916 = shalt.err (!%p1913_p9)
}
  0x26   : > { %s2170_s23 = smov 128   ;;  %s2171_s28 = smov 8  }
  0x27   : > { %1751 = dma.hbm_to_vmem [thread:$0]  (!%p2260_p6), %s2641_s1, 256, %s2249_s29, [#allocation6], %s2170_s23, %s2170_s23, %s2171_s28  }
  0x28   : > { %s1917_s16 = scalar_lea.hbm %s2643_s3, 512 }
  0x29   : > { %p1918_p4 = scmp.ne.s32.totalorder %s2643_s3, %s1917_s16  ;;  %p1924_p12 = scmp.lt.u32.totalorder %s1917_s16, %s2643_s3 }
  0x2b   : > { %p1920_p10 = pnand %p1918_p4, %p2276_p8 }
  0x2d   : > { %p1921_p11 = pneg %p1920_p10 }
  0x2f   : > { %p1926_p13 = pnand %p1924_p12, %p1921_p11 }
  0x31   : > { %1929 = shalt.err (!%p1926_p13)
}
  0x32   : > { %s1930_s29 = scalar_lea.vmem %s2264_s10, 512  ;;  %p1938_p7 = scmp.lt.s32.totalorder %s2264_s10, %s2264_s10 }
  0x33   : > { %p1931_p0 = scmp.ne.s32.totalorder %s2264_s10, %s1930_s29  ;;  %p1939_p9 = scmp.lt.s32.totalorder %s1930_s29, %s1930_s29 }
  0x35   : > { %p1933_p2 = pnand %p1931_p0, %p2276_p8  ;;  %p1940_p4 = por %p1939_p9, %p1938_p7 }
  0x37   : > { %p1934_p5 = pneg %p1933_p2 }
  0x39   : > { %p1941_p10 = pnand %p1940_p4, %p1934_p5 }
  0x3b   : > { %1944 = shalt.err (!%p1941_p10)
}
  0x3c   : > { %1757 = dma.hbm_to_vmem [thread:$0]  (!%p2260_p6), %s2643_s3, 512, %s2264_s10, [#allocation9], %s2170_s23, %s2170_s23, %s2171_s28  }
  0x3d   : > { %s1945_s15 = scalar_lea.hbm %s2645_s5, 512 }
  0x3e   : > { %p1946_p11 = scmp.ne.s32.totalorder %s2645_s5, %s1945_s15  ;;  %p1952_p0 = scmp.lt.u32.totalorder %s1945_s15, %s2645_s5 }
  0x40   : > { %p1948_p12 = pnand %p1946_p11, %p2276_p8 }
  0x42   : > { %p1949_p13 = pneg %p1948_p12 }
  0x44   : > { %p1954_p2 = pnand %p1952_p0, %p1949_p13 }
  0x46   : > { %1957 = shalt.err (!%p1954_p2)
}
  0x47   : > { %s1958_s10 = scalar_lea.vmem %s2266_s13, 512  ;;  %p1966_p4 = scmp.lt.s32.totalorder %s2266_s13, %s2266_s13 }
  0x48   : > { %p1959_p5 = scmp.ne.s32.totalorder %s2266_s13, %s1958_s10  ;;  %p1967_p10 = scmp.lt.s32.totalorder %s1958_s10, %s1958_s10 }
  0x4a   : > { %p1961_p7 = pnand %p1959_p5, %p2276_p8  ;;  %p1968_p11 = por %p1967_p10, %p1966_p4 }
  0x4c   : > { %p1962_p9 = pneg %p1961_p7 }
  0x4e   : > { %p1969_p12 = pnand %p1968_p11, %p1962_p9 }
  0x50   : > { %1972 = shalt.err (!%p1969_p12)
}
  0x51   : > { %1763 = dma.hbm_to_vmem [thread:$0]  (!%p2260_p6), %s2645_s5, 512, %s2266_s13, [#allocation12], %s2170_s23, %s2170_s23, %s2171_s28  }
  0x52   : > { %s2172_s22 = smov [#allocation7]   ;;  %s2173_s12 = smov [#allocation10]  }
  0x53   : > { %s234_s9 = sshll.u32 %s2172_s22, 4  ;;  %s260_s14 = sshll.u32 %s2173_s12, 4  ;;  %s235_s9 = int_to_ptr.vmem [resolvable:$true] %s234_s9  ;;  %s261_s14 = int_to_ptr.vmem [resolvable:$true] %s260_s14 }
  0x54   : > { %s1973_s17 = scalar_lea.hbm %s2642_s2, 256 }
  0x55   : > { %p1974_p13 = scmp.ne.s32.totalorder %s2642_s2, %s1973_s17  ;;  %p1980_p5 = scmp.lt.u32.totalorder %s1973_s17, %s2642_s2 }
  0x57   : > { %p1976_p0 = pnand %p1974_p13, %p2276_p8 }
  0x59   : > { %p1977_p2 = pneg %p1976_p0 }
  0x5b   : > { %p1982_p7 = pnand %p1980_p5, %p1977_p2 }
  0x5d   : > { %1985 = shalt.err (!%p1982_p7)
}
  0x5e   : > { %s1986_s13 = scalar_lea.vmem %s235_s9, 256  ;;  %p1994_p11 = scmp.lt.s32.totalorder %s235_s9, %s235_s9 }
  0x5f   : > { %p1987_p9 = scmp.ne.s32.totalorder %s235_s9, %s1986_s13  ;;  %p1995_p12 = scmp.lt.s32.totalorder %s1986_s13, %s1986_s13 }
  0x61   : > { %p1989_p4 = pnand %p1987_p9, %p2276_p8  ;;  %p1996_p1 = por %p1995_p12, %p1994_p11 }
  0x63   : > { %p1990_p10 = pneg %p1989_p4 }
  0x65   : > { %p1997_p3 = pnand %p1996_p1, %p1990_p10 }
  0x67   : > { %2000 = shalt.err (!%p1997_p3)
}
  0x68   : > { %1754 = dma.hbm_to_vmem [thread:$0]  (!%p2260_p6), %s2642_s2, 256, %s235_s9, [#allocation6], %s2170_s23, %s2170_s23, %s2171_s28  }
  0x69   : > { %s2001_s16 = scalar_lea.hbm %s2644_s4, 512 }
  0x6a   : > { %p2002_p1 = scmp.ne.s32.totalorder %s2644_s4, %s2001_s16  ;;  %p2008_p0 = scmp.lt.u32.totalorder %s2001_s16, %s2644_s4 }
  0x6c   : > { %p2004_p3 = pnand %p2002_p1, %p2276_p8 }
  0x6e   : > { %p2005_p13 = pneg %p2004_p3 }
  0x70   : > { %p2010_p2 = pnand %p2008_p0, %p2005_p13 }
  0x72   : > { %2013 = shalt.err (!%p2010_p2)
}
  0x73   : > { %s2014_s21 = scalar_lea.vmem %s261_s14, 512  ;;  %p2022_p4 = scmp.lt.s32.totalorder %s261_s14, %s261_s14 }
  0x74   : > { %p2015_p5 = scmp.ne.s32.totalorder %s261_s14, %s2014_s21  ;;  %p2023_p10 = scmp.lt.s32.totalorder %s2014_s21, %s2014_s21 }
  0x76   : > { %p2017_p7 = pnand %p2015_p5, %p2276_p8  ;;  %p2024_p11 = por %p2023_p10, %p2022_p4 }
  0x78   : > { %p2018_p9 = pneg %p2017_p7 }
  0x7a   : > { %p2025_p12 = pnand %p2024_p11, %p2018_p9 }
  0x7c   : > { %2028 = shalt.err (!%p2025_p12)
}
  0x7d   : > { %1760 = dma.hbm_to_vmem [thread:$0]  (!%p2260_p6), %s2644_s4, 512, %s261_s14, [#allocation9], %s2170_s23, %s2170_s23, %s2171_s28  }
  0x7e   : > { %s2174_s29 = smov [#allocation13]   ;;  %s2029_s16 = scalar_lea.hbm %s2646_s6, 512 }
  0x7f   : > { %s286_s22 = sshll.u32 %s2174_s29, 4  ;;  %p2030_p1 = scmp.ne.s32.totalorder %s2646_s6, %s2029_s16  ;;  %s287_s22 = int_to_ptr.vmem [resolvable:$true] %s286_s22 }
  0x80   : > { %p2036_p0 = scmp.lt.u32.totalorder %s2029_s16, %s2646_s6 }
  0x81   : > { %p2032_p3 = pnand %p2030_p1, %p2276_p8 }
  0x83   : > { %p2033_p13 = pneg %p2032_p3 }
  0x85   : > { %p2038_p2 = pnand %p2036_p0, %p2033_p13 }
  0x87   : > { %2041 = shalt.err (!%p2038_p2)
}
  0x88   : > { %s2042_s14 = scalar_lea.vmem %s287_s22, 512  ;;  %p2050_p4 = scmp.lt.s32.totalorder %s287_s22, %s287_s22 }
  0x89   : > { %p2043_p5 = scmp.ne.s32.totalorder %s287_s22, %s2042_s14  ;;  %p2051_p10 = scmp.lt.s32.totalorder %s2042_s14, %s2042_s14 }
  0x8b   : > { %p2045_p7 = pnand %p2043_p5, %p2276_p8  ;;  %p2052_p11 = por %p2051_p10, %p2050_p4 }
  0x8d   : > { %p2046_p9 = pneg %p2045_p7 }
  0x8f   : > { %p2053_p12 = pnand %p2052_p11, %p2046_p9 }
  0x91   : > { %2056 = shalt.err (!%p2053_p12)
}
  0x92   : > { %1766 = dma.hbm_to_vmem [thread:$0]  (!%p2260_p6), %s2646_s6, 512, %s287_s22, [#allocation12], %s2170_s23, %s2170_s23, %s2171_s28  }
  0x93   : > { %s1454_s11 = sadd.s32 4294967294, %s2165_s27   ;;  %s2417_s19 = sadd.s32 1, %s2165_s27  }
  0x94   : > { %s30_s13 = ssub.s32 %s2165_s27, %s2417_s19  ;;  %s33_s29 = sadd.s32 1, %s2161_s26 }
  0x95   : > { %p31_p8 = scmp.eq.s32.totalorder %s30_s13, 0  ;;  %p40_p1 = scmp.ne.s32.totalorder %s2161_s26, %s2157_s25 }
  0x96   : > { %p41_p3 = scmp.eq.s32.totalorder %s2165_s27, 0  ;;  %p46_p13 = scmp.ne.s32.totalorder %s2157_s25, %s2153_s24 }
  0x97   : > { %s2428_s12 = scalar_select %p31_p8, %s2161_s26, %s33_s29  }
  0x98   : > { %p2430_p0 = por %p41_p3, %p40_p1  ;;  %p2655_p2 = scmp.eq.s32.totalorder %s2244_s30, 0 }
  0x99   : > { %p196_p5 = scmp.eq.s32.totalorder %s2244_s30, 1  ;;  %p202_p7 = scmp.eq.s32.totalorder %s1454_s11, 1 }
  0x9a   : > { %p2436_p6 = por %p2655_p2, %p46_p13  ;;  %p1781_p9 = scmp.lt.s32.totalorder %s2165_s27, 2 }
  0x9b   : > { %s300_s28 = sand.u32 1, %s2161_s26   ;;  %p2443_p4 = por %p196_p5, %p40_p1 }
  0x9c   : > { %p2447_p10 = por %p202_p7, %p46_p13  ;;  %s1463_s17 = sshll.u32 %s300_s28, 3 }
  0x9d   : > { %s2657_s22 = scalar_select %p2443_p4, 1, 0 }
  0x9e   : > { %s2658_s16 = scalar_select %p2447_p10, 1, 0 }
  0x9f   : > { %s1464_s18 = sshll.u32 %s2165_s27, 7  ;;  %s304_s21 = scalar_lea.vmem [#allocation2], %s1463_s17 }
  0xa0   : > { %s2455_s14 = scalar_lea.hbm %s2640_s0, %s1464_s18  ;;  %s311_s9 = sshll.u32 %s304_s21, 4  ;;  %s2457_s9 = int_to_ptr.vmem [resolvable:$true] %s311_s9 }
  0xa1   : > { %p2461_p11 = pnand %p1781_p9, %p2430_p0  ;;  %s301_s13 = scalar_lea.sflag [#allocation3], %s300_s28 }
  0xa2   : > { %s2057_s29 = scalar_lea.hbm %s2455_s14, 128  ;;  %s2062_s20 = scalar_lea.hbm %s2640_s0, 256 }
  0xa3   : > { %p2058_p12 = scmp.ne.s32.totalorder %s2455_s14, %s2057_s29  ;;  %p2059_p8 = pneg %p2461_p11 }
  0xa4   : > { %p2063_p13 = scmp.lt.u32.totalorder %s2455_s14, %s2640_s0  ;;  %p2064_p0 = scmp.lt.u32.totalorder %s2062_s20, %s2057_s29 }
  0xa5   : > { %p2060_p1 = pnand %p2059_p8, %p2058_p12  ;;  %p2066_p5 = scmp.lt.u32.totalorder %s2057_s29, %s2455_s14 }
  0xa6   : > { %p2065_p2 = por %p2064_p0, %p2063_p13 }
  0xa7   : > { %p2061_p3 = pneg %p2060_p1 }
  0xa8   : > { %p2067_p7 = por %p2066_p5, %p2065_p2 }
  0xaa   : > { %p2068_p9 = pnand %p2067_p7, %p2061_p3 }
  0xac   : > { %2071 = shalt.err (!%p2068_p9)
}
  0xad   : > { %s2072_s28 = scalar_lea.vmem %s2457_s9, 128  ;;  %s2175_s21 = smov [#allocation2]  }
  0xae   : > { %p2073_p12 = scmp.ne.s32.totalorder %s2457_s9, %s2072_s28  ;;  %s2077_s17 = sshll.u32 %s2175_s21, 4  ;;  %s2078_s17 = int_to_ptr.vmem [resolvable:$false] %s2077_s17 }
  0xaf   : > { %s2079_s18 = scalar_lea.vmem %s2078_s17, 256  ;;  %p2080_p4 = scmp.lt.s32.totalorder %s2457_s9, %s2078_s17 }
  0xb0   : > { %p2075_p1 = pnand %p2073_p12, %p2059_p8  ;;  %p2081_p13 = scmp.lt.s32.totalorder %s2079_s18, %s2072_s28 }
  0xb2   : > { %p2076_p10 = pneg %p2075_p1  ;;  %p2082_p0 = por %p2081_p13, %p2080_p4 }
  0xb4   : > { %p2083_p2 = pnand %p2082_p0, %p2076_p10 }
  0xb6   : > { %2086 = shalt.err (!%p2083_p2)
}
  0xb7   : > { %1770 = dma.hbm_to_vmem [thread:$0]  (!%p2461_p11), %s2455_s14, 128, %s2457_s9, %s301_s13  }
  0xb8   : > { %p2660_p3 = scmp.ne.s32.totalorder %s2651_s8, 0 }
  0xb9   : > { %s2493_s29 = sand.u32 (!%p2660_p3), 1, %s2157_s25  }
  0xba   : > { %320 = sbr.rel (%p2660_p3) target bundleno = 1436 (0x59c), region = 48  ;;  %s1466_s20 = sshll.u32 (!%p2660_p3), %s2493_s29, 3 }
  0xbb   : > { %s323_s15 = scalar_lea.sflag (!%p2660_p3), [#allocation3], %s2493_s29  ;;  %s2499_s10 = scalar_lea.vmem (!%p2660_p3), [#allocation2], %s1466_s20 }
  0xc1   : > { %2132 = dma.done.wait (%p2436_p6), %s323_s15, 128  }
  0xc2   : > { %2134 = vsyncadd (%p2436_p6), %s323_s15, 4294967168  ;;  %p2661_p4 = scmp.eq.s32.totalorder %s2244_s30, 0 }
  0xc4   : > { %2136 = dma.done.wait (%p2661_p4), [#allocation6], 512   ;;  %p2662_p10 = pmov %p2661_p4 }
  0xc5   : > { %p2663_p11 = pmov %p2661_p4 }
  0xc6   : > { %2138 = vsyncadd (%p2662_p10), [#allocation6], 4294966784 }
  0xc7   : > { %2140 = dma.done.wait (%p2663_p11), [#allocation9], 1024   ;;  %p2664_p8 = pmov %p2661_p4 }
  0xc8   : > { %p2665_p5 = pmov %p2661_p4 }
  0xc9   : > { %2142 = vsyncadd (%p2664_p8), [#allocation9], 4294966272 }
  0xca   : > { %2144 = dma.done.wait (%p2665_p5), [#allocation12], 1024   ;;  %p2666_p7 = pmov %p2661_p4 }
  0xcb   : > { %v2176_v0 = vmov 0.0|0.0   ;;  %vm2177_vm0 = vmmov 0   ;;  %v2178_v1 = vmov 0.0   ;;  %vm386_vm1 = vcmask 261120   ;;  %v462_v2 = vld [vmem:[#allocation10] sm:$0xff]  ;;  %v463_v3 = vld [vmem:[#allocation10 + $0x8] sm:$0xff] }
  0xcc   : > { %2146 = vsyncadd (%p2666_p7), [#allocation12], 4294966272  ;;  %1653 = vmatprep.subr.bf16.mxu0 %v2176_v0  ;;  %1564 = vmatprep.mubr.msk.f32.mxu0 %vm2177_vm0, %v2178_v1  ;;  %v464_v4 = vld [vmem:[#allocation10 + $0x10] sm:$0xff]  ;;  %v1659_v5 = vpack.c.bf16 %v463_v3, %v462_v2  ;;  %v465_v6 = vld [vmem:[#allocation10 + $0x18] sm:$0xff]  ;;  %vm675_vm2 = vcmask 64512   ;;  %s2179_s8 = smov 104   ;;  %v785_v63 = vlaneseq }
  0xcd   : > { %v460_v7 = vld [vmem:[#allocation5] sm:$0xff]  ;;  %v1663_v8 = vpack.c.bf16 %v465_v6, %v464_v4  ;;  %v383_v10 = vld [vmem:[#allocation8 + $0x8] sm:$0xff]  ;;  %v384_v11 = vld [vmem:[#allocation8 + $0x10] sm:$0xff]  ;;  %s2180_s23 = smov 120   ;;  %s2181_s14 = smov 112   ;;  %vm884_vm5 = vcmask 523264  }
  0xce   : > { %1575 = vmatprep.mubr.msk.f32.mxu1 %vm386_vm1, %v460_v7  ;;  %v382_v9 = vld [vmem:[#allocation8] sm:$0xff]  ;;  %1660 = vmatprep.subr.bf16.mxu1 %v1659_v5  ;;  %v385_v13 = vld [vmem:[#allocation8 + $0x18] sm:$0xff]  ;;  %v461_v15 = vld [vmem:[#allocation5 + $0x8] sm:$0xff]  ;;  %v839_v7 = vand.u32 127, %v785_v63  ;;  %s1504_s9 = sshll.u32 %s2244_s30, 7  ;;  %s380_s11 = scalar_lea.vmem [#allocation14], %s1466_s20 }
  0xcf   : > { %v1654_v12 = vpack.c.bf16 %v383_v10, %v382_v9  ;;  %1662 = vmatpush3.bf16.msra.mxu1 %v1659_v5  ;;  %v1657_v14 = vpack.c.bf16 %v385_v13, %v384_v11  ;;  %v381_v16 = vld [vmem:[%s2499_s10] sm:$0xff]  ;;  %v549_v17 = vld [vmem:[#allocation11] sm:$0xff]  ;;  %v550_v18 = vld [vmem:[#allocation11 + $0x8] sm:$0xff]  ;;  %s1327_s13 = sshll.u32 %s380_s11, 4  ;;  %s2595_s17 = scalar_lea.hbm %s2647_s7, %s1504_s9  ;;  %s2597_s13 = int_to_ptr.vmem [resolvable:$true] %s1327_s13 }
  0xd0   : > { %1664 = vmatprep.subr.bf16.mxu1 %v1663_v8  ;;  %v1667_v19 = vpack.c.bf16 %v550_v18, %v549_v17  ;;  %v551_v20 = vld [vmem:[#allocation11 + $0x10] sm:$0xff]  ;;  %v552_v21 = vld [vmem:[#allocation11 + $0x18] sm:$0xff]  ;;  %vm2525_vm3 = vmpackc.low %vm675_vm2, %vm675_vm2  ;;  %v844_v13 = vand.u32 7, %v839_v7  ;;  %s1314_s18 = scalar_lea.sflag [#allocation4], %s2493_s29  ;;  %s2087_s30 = scalar_lea.vmem %s2597_s13, 128 }
  0xd1   : > { %1655 = vmatpush3.bf16.msra.mxu0 %v1654_v12  ;;  %v1671_v25 = vpack.c.bf16 %v552_v21, %v551_v20  ;;  %v547_v30 = vld [vmem:[#allocation7] sm:$0xff]  ;;  %v548_v31 = vld [vmem:[#allocation7 + $0x8] sm:$0xff]  ;;  %p2088_p6 = scmp.ne.s32.totalorder %s2597_s13, %s2087_s30  ;;  %p2669_p9 = scmp.ne.s32.totalorder %s2657_s22, 0 }
  0xd2   : > { %1656 = vmatprep.subr.bf16.mxu0 %v2176_v0  ;;  %v786_v0 = vshrl.u32 %v785_v63, 7  ;;  %v1017_v7 = vld [vmem:[#allocation13 + $0x18] sm:$0xff]  ;;  %s2182_s20 = smov [#allocation14]  }
  0xd3   : > { %1666 = vmatpush3.bf16.msra.mxu1 %v1663_v8  ;;  %p2089_p12 = pnand %p2088_p6, %p2669_p9  ;;  %s2091_s15 = sshll.u32 %s2182_s20, 4  ;;  %s2092_s15 = int_to_ptr.vmem [resolvable:$false] %s2091_s15 }
  0xd4   : > { %v787_v6 = vadd.s32 8, %v786_v0  ;;  %s2093_s10 = scalar_lea.vmem %s2092_s15, 256  ;;  %p2094_p13 = scmp.lt.s32.totalorder %s2597_s13, %s2092_s15 }
  0xd5   : > { %1658 = vmatpush3.bf16.msra.mxu0 %v1657_v14  ;;  %v789_v14 = vadd.s32 24, %v786_v0  ;;  %p2090_p1 = pneg %p2089_p12  ;;  %p2095_p0 = scmp.lt.s32.totalorder %s2093_s10, %s2087_s30 }
  0xd6   : > { %1576 = vmatmul.mubr.msk.f32.vlgmr.msra.gmra.mrb[0].mxu1 %vm386_vm1, %v461_v15  ;;  %1668 = vmatprep.subr.bf16.mxu0 %v1667_v19  ;;  %v801_v12 = vand.u32 7, %v787_v6  ;;  %v794_v15 = vand.u32 7, %v786_v0 }
  0xd7   : > { %v815_v17 = vand.u32 7, %v789_v14  ;;  %p2096_p2 = por %p2095_p0, %p2094_p13 }
  0xd8   : > { %1565 = vmatmul.mubr.msk.f32.vlgmr.msra.gmra.mrb[0].mxu0 %vm386_vm1, %v381_v16  ;;  %v788_v16 = vadd.s32 16, %v786_v0  ;;  %vm853_vm4 = vcmp.eq.s32.totalorder %v801_v12, %v844_v13  ;;  %vm852_vm6 = vcmp.eq.s32.totalorder %v794_v15, %v844_v13  ;;  %v1015_v0 = vld [vmem:[#allocation13 + $0x8] sm:$0xff] }
  0xd9   : > { %1670 = vmatpush3.bf16.msra.mxu0 %v1667_v19  ;;  %1586 = vmatprep.mubr.msk.f32.mxu0 %vm386_vm1, %v547_v30  ;;  %vm855_vm7 = vcmp.eq.s32.totalorder %v815_v17, %v844_v13  ;;  %p2097_p3 = pnand %p2096_p2, %p2090_p1 }
  0xda   : > { %1672 = vmatprep.subr.bf16.mxu0 %v1671_v25  ;;  %v808_v21 = vand.u32 7, %v788_v16 }
  0xdc   : > { %vm854_vm8 = vcmp.eq.s32.totalorder %v808_v21, %v844_v13 }
  0xdd   : > { %1674 = vmatpush3.bf16.msra.mxu0 %v1671_v25 }
  0xe0   : > { %1587 = vmatmul.mubr.msk.f32.vlgmr.msra.gmra.mrb[2].mxu0 %vm386_vm1, %v548_v31 }
 0x1a9   : > { %v1577_v22 = vpop.f32.mrb[0].mxu1 }
 0x1aa   : > { %v538_v23 = vpop.f32.mrb[1].mxu1 }
 0x1ab   : > { %v456_v24 = vpop.f32.mrb[0].mxu0  ;;  %v1675_v26 = vpack.c.bf16 %v1577_v22, %v538_v23  ;;  %v1845_v27 = vpack.i.bf16 %v1577_v22, %v538_v23 }
 0x1ac   : > { %v1566_v29 = vpop.f32.mrb[1].mxu0  ;;  %1605 = vmatprep.mubr.msk.f32.mxu1 %vm675_vm2, %v456_v24 }
 0x1ad   : > { %1846 = vrot.lane.b32.xlu1 %v1845_v27, %s2179_s8  ;;  %1836 = vrot.lane.b32.xlu0 %v1845_v27, %s2180_s23 }
 0x1ae   : > { %1677 = vmatprep.subr.msk.bf16.mxu1 %vm2525_vm3, %v1675_v26 }
 0x1af   : > { %1680 = vmatpush3.bf16.xpose.msk.msra.mxu1 %vm2525_vm3, %v1675_v26 }
 0x1b1   : > { %1841 = vrot.lane.b32.xlu0 %v1845_v27, %s2181_s14  ;;  %635 = vrot.lane.b32.xlu1 %v456_v24, %s2180_s23 }
 0x1b3   : > { %v1588_v47 = vpop.f32.mrb[2].mxu0 }
 0x1b4   : > { %v625_v48 = vpop.f32.mrb[3].mxu0 }
 0x1b5   : > { %637 = vrot.lane.b32.xlu0 %v456_v24, %s2181_s14  ;;  %639 = vrot.lane.b32.xlu1 %v456_v24, %s2179_s8  ;;  %v2560_v49 = vpack.i.bf16 %v1588_v47, %v625_v48  ;;  %v1699_v50 = vpack.c.bf16 %v1588_v47, %v625_v48 }
 0x1b7   : > { %1700 = vmatprep.subr.bf16.mxu0 %v1699_v50 }
 0x1b8   : > { %1702 = vmatpush3.bf16.msra.mxu0 %v1699_v50 }
 0x1b9   : > { %1851 = vrot.lane.b32.xlu1 %v2560_v49, %s2180_s23 }
 0x21f   : > { %v1837_v32 = vpop.permute.xlu0 %1836  ;;  %v1847_v39 = vpop.permute.xlu1 %1846 }
 0x220   : > { %v1839_v33 = vunpack.i.h.bf16 %v1837_v32  ;;  %v1838_v34 = vunpack.i.l.bf16 %v1837_v32  ;;  %v1849_v41 = vunpack.i.h.bf16 %v1847_v39  ;;  %v1848_v42 = vunpack.i.l.bf16 %v1847_v39 }
 0x222   : > { %v1681_v35 = vpack.c.bf16 %v1839_v33, %v1838_v34  ;;  %v1693_v43 = vpack.c.bf16 %v1849_v41, %v1848_v42 }
 0x223   : > { %v1842_v36 = vpop.permute.xlu0 %1841  ;;  %v636_v44 = vpop.permute.xlu1 %635 }
 0x224   : > { %v1844_v37 = vunpack.i.h.bf16 %v1842_v36  ;;  %v1843_v38 = vunpack.i.l.bf16 %v1842_v36  ;;  %1683 = vmatprep.subr.msk.bf16.mxu1 %vm2525_vm3, %v1681_v35 }
 0x225   : > { %1686 = vmatpush3.bf16.xpose.msk.msra.mxu1 %vm2525_vm3, %v1681_v35 }
 0x226   : > { %v1687_v40 = vpack.c.bf16 %v1844_v37, %v1843_v38 }
 0x227   : > { %v638_v45 = vpop.permute.xlu0 %637  ;;  %v640_v46 = vpop.permute.xlu1 %639 }
 0x228   : > { %1689 = vmatprep.subr.msk.bf16.mxu1 %vm2525_vm3, %v1687_v40 }
 0x22b   : > { %v1852_v51 = vpop.permute.xlu1 %1851 }
 0x22c   : > { %v1854_v52 = vunpack.i.h.bf16 %v1852_v51  ;;  %v1853_v53 = vunpack.i.l.bf16 %v1852_v51 }
 0x22d   : > { %1692 = vmatpush3.bf16.xpose.msk.msra.mxu1 %vm2525_vm3, %v1687_v40 }
 0x22e   : > { %1695 = vmatprep.subr.msk.bf16.mxu1 %vm2525_vm3, %v1693_v43  ;;  %v1703_v54 = vpack.c.bf16 %v1854_v52, %v1853_v53 }
 0x230   : > { %1704 = vmatprep.subr.bf16.mxu0 %v1703_v54 }
 0x231   : > { %1706 = vmatpush3.bf16.msra.mxu0 %v1703_v54 }
 0x235   : > { %1698 = vmatpush3.bf16.xpose.msk.msra.mxu1 %vm2525_vm3, %v1693_v43 }
 0x236   : > { %1633 = vmatprep.subr.mxu1 %v2178_v1 }
 0x23c   : > { %1606 = vmatmul.mubr.msk.f32.vlgmr.msra.gmra.mrb[2].mxu1 %vm675_vm2, %v636_v44 }
 0x23d   : > { %1608 = vmatprep.mubr.msk.f32.mxu1 %vm675_vm2, %v638_v45  ;;  %1634 = vmatpush3.msra.mxu1 %v1015_v0 }
 0x240   : > { %1609 = vmatmul.mubr.msk.f32.gmra.mrb[4].mxu1 %vm675_vm2, %v640_v46 }
 0x241   : > { %1635 = vmatprep.mubr.msk.f32.mxu1 %vm2177_vm0, %v2178_v1 }
 0x30f   : > { %v1607_v55 = vpop.f32.mrb[2].mxu1 }
 0x310   : > { %v1492_v56 = vmul.f32 -1.442695, %v1607_v55  ;;  %v766_v57 = vpop.f32.mrb[3].mxu1 }
 0x311   : > { %v1491_v58 = vmul.f32 -1.442695, %v766_v57 }
 0x312   : > { %1865 = vpow2.f32 %v1492_v56 }
 0x313   : > { %1867 = vpow2.f32 %v1491_v58  ;;  %v1610_v59 = vpop.f32.mrb[4].mxu1 }
 0x314   : > { %v1494_v60 = vmul.f32 -1.442695, %v1610_v59  ;;  %v776_v61 = vpop.f32.mrb[5].mxu1 }
 0x315   : > { %v1493_v62 = vmul.f32 -1.442695, %v776_v61 }
 0x316   : > { %1869 = vpow2.f32 %v1494_v60  ;;  %v1014_v60 = vld [vmem:[#allocation13] sm:$0xff] }
 0x317   : > { %1871 = vpow2.f32 %v1493_v62 }
 0x31c   : > { %v1866_v2 = vpop.eup %1865 }
 0x31d   : > { %v1868_v3 = vpop.eup %1867  ;;  %v869_v4 = vadd.f32 1.0, %v1866_v2 }
 0x31e   : > { %v868_v5 = vadd.f32 1.0, %v1868_v3  ;;  %v1016_v3 = vld [vmem:[#allocation13 + $0x10] sm:$0xff] }
 0x31f   : > { %1873 = vrcp.f32 %v869_v4 }
 0x320   : > { %v1870_v8 = vpop.eup %1869  ;;  %1875 = vrcp.f32 %v868_v5 }
 0x321   : > { %v1872_v9 = vpop.eup %1871  ;;  %v871_v10 = vadd.f32 1.0, %v1870_v8 }
 0x322   : > { %v870_v11 = vadd.f32 1.0, %v1872_v9 }
 0x323   : > { %1877 = vrcp.f32 %v871_v10 }
 0x324   : > { %1879 = vrcp.f32 %v870_v11 }
 0x329   : > { %v1874_v18 = vpop.eup %1873 }
 0x32a   : > { %v1876_v19 = vpop.eup %1875  ;;  %v881_v20 = vsel %vm853_vm4, %v1874_v18, 0.0 }
 0x32b   : > { %v888_v22 = vsel %vm884_vm5, %v881_v20, 0.0  ;;  %v880_v23 = vsel %vm852_vm6, %v1876_v19, 0.0 }
 0x32c   : > { %889 = vadd.xlane.f32.xlu1 %v888_v22  ;;  %v885_v24 = vsel %vm884_vm5, %v880_v23, 0.0 }
 0x32d   : > { %v1878_v25 = vpop.eup %1877  ;;  %886 = vadd.xlane.f32.xlu0 %v885_v24 }
 0x32e   : > { %v1880_v26 = vpop.eup %1879  ;;  %v883_v27 = vsel %vm855_vm7, %v1878_v25, 0.0 }
 0x32f   : > { %v894_v28 = vsel %vm884_vm5, %v883_v27, 0.0  ;;  %v882_v29 = vsel %vm854_vm8, %v1880_v26, 0.0 }
 0x330   : > { %v891_v30 = vsel %vm884_vm5, %v882_v29, 0.0 }
 0x331   : > { %895 = vadd.xlane.f32.xlu0 %v894_v28 }
 0x335   : > { %892 = vadd.xlane.f32.xlu0 %v891_v30 }
 0x33d   : > { %1861 = vrot.lane.b32.xlu1 %v2560_v49, %s2179_s8 }
 0x34b   : > { %1856 = vrot.lane.b32.xlu0 %v2560_v49, %s2181_s14 }
 0x3b9   : > { %v890_v31 = vpop.xlane.xlu1 %889 }
 0x3ba   : > { %1881 = vrcp.f32 %v890_v31  ;;  %v887_v32 = vpop.xlane.xlu0 %886 }
 0x3bb   : > { %1883 = vrcp.f32 %v887_v32 }
 0x3bd   : > { %v1862_v36 = vpop.permute.xlu1 %1861 }
 0x3be   : > { %v896_v33 = vpop.xlane.xlu0 %895  ;;  %v1864_v41 = vunpack.i.h.bf16 %v1862_v36  ;;  %v1863_v42 = vunpack.i.l.bf16 %v1862_v36 }
 0x3bf   : > { %1885 = vrcp.f32 %v896_v33 }
 0x3c0   : > { %v1711_v51 = vpack.c.bf16 %v1864_v41, %v1863_v42 }
 0x3c2   : > { %v893_v34 = vpop.xlane.xlu0 %892 }
 0x3c3   : > { %1887 = vrcp.f32 %v893_v34 }
 0x3c4   : > { %v1882_v35 = vpop.eup %1881 }
 0x3c5   : > { %v1884_v37 = vpop.eup %1883  ;;  %v902_v38 = vmul.f32 %v1882_v35, %v890_v31 }
 0x3c6   : > { %v901_v39 = vmul.f32 %v1884_v37, %v887_v32  ;;  %v1857_v40 = vpop.permute.xlu0 %1856 }
 0x3c7   : > { %v1859_v43 = vunpack.i.h.bf16 %v1857_v40  ;;  %v1858_v44 = vunpack.i.l.bf16 %v1857_v40  ;;  %v906_v47 = vsub.f32 2.0, %v902_v38 }
 0x3c8   : > { %v905_v45 = vsub.f32 2.0, %v901_v39 }
 0x3c9   : > { %v1886_v46 = vpop.eup %1885  ;;  %v1707_v48 = vpack.c.bf16 %v1859_v43, %v1858_v44  ;;  %v910_v54 = vmul.f32 %v1882_v35, %v906_v47 }
 0x3ca   : > { %v909_v49 = vmul.f32 %v1884_v37, %v905_v45  ;;  %v904_v50 = vmul.f32 %v1886_v46, %v896_v33 }
 0x3cb   : > { %1708 = vmatprep.subr.bf16.mxu0 %v1707_v48  ;;  %v914_v58 = vmul.f32 %v910_v54, %v881_v20 }
 0x3cc   : > { %v913_v52 = vmul.f32 %v909_v49, %v880_v23  ;;  %1710 = vmatpush3.bf16.msra.mxu0 %v1707_v48  ;;  %v908_v55 = vsub.f32 2.0, %v904_v50 }
 0x3cd   : > { %v1888_v53 = vpop.eup %1887  ;;  %1712 = vmatprep.subr.bf16.mxu0 %v1711_v51 }
 0x3ce   : > { %v903_v56 = vmul.f32 %v1888_v53, %v893_v34  ;;  %1627 = vmatprep.mubr.msk.f32.mxu0 %vm884_vm5, %v913_v52  ;;  %v912_v59 = vmul.f32 %v1886_v46, %v908_v55 }
 0x3d0   : > { %v907_v57 = vsub.f32 2.0, %v903_v56  ;;  %1714 = vmatpush3.bf16.msra.mxu0 %v1711_v51  ;;  %v916_v63 = vmul.f32 %v912_v59, %v883_v27 }
 0x3d1   : > { %1638 = vmatprep.subr.mxu0 %v2178_v1 }
 0x3d2   : > { %v911_v61 = vmul.f32 %v1888_v53, %v907_v57 }
 0x3d3   : > { %1628 = vmatmul.mubr.msk.f32.vlgmr.msra.gmra.mrb[4].mxu0 %vm884_vm5, %v914_v58 }
 0x3d4   : > { %v915_v62 = vmul.f32 %v911_v61, %v882_v29  ;;  %1639 = vmatpush3.msra.mxu0 %v1014_v60 }
 0x3d5   : > { %1643 = vmatprep.subr.mxu0 %v2178_v1 }
 0x3d6   : > { %1630 = vmatprep.mubr.msk.f32.mxu0 %vm884_vm5, %v915_v62 }
 0x3d7   : > { %1631 = vmatmul.mubr.msk.f32.gmra.mrb[6].mxu0 %vm884_vm5, %v916_v63 }
 0x3d8   : > { %1640 = vmatprep.mubr.msk.f32.mxu0 %vm2177_vm0, %v2178_v1 }
 0x4a6   : > { %v1629_v2 = vpop.f32.mrb[4].mxu0 }
 0x4a7   : > { %v995_v4 = vpop.f32.mrb[5].mxu0  ;;  %1636 = vmatmul.mubr.msk.f32.vlgmr.msra.gmra.mrb[6].mxu1 %vm675_vm2, %v1629_v2 }
 0x4a8   : > { %1641 = vmatmul.mubr.msk.f32.vlgmr.msra.gmra.mrb[8].mxu0 %vm675_vm2, %v995_v4 }
 0x4a9   : > { %1644 = vmatpush3.msra.mxu0 %v1016_v3  ;;  %1645 = vmatprep.mubr.msk.f32.mxu0 %vm2177_vm0, %v2178_v1 }
 0x4aa   : > { %v1632_v5 = vpop.f32.mrb[6].mxu0  ;;  %1648 = vmatprep.subr.mxu0 %v2178_v1 }
 0x4ab   : > { %v1005_v6 = vpop.f32.mrb[7].mxu0 }
 0x4b0   : > { %1646 = vmatmul.mubr.msk.f32.vlgmr.msra.gmra.mrb[8].mxu0 %vm675_vm2, %v1005_v6 }
 0x4b1   : > { %1649 = vmatpush3.msra.mxu0 %v1017_v7  ;;  %1650 = vmatprep.mubr.msk.f32.mxu0 %vm2177_vm0, %v2178_v1 }
 0x4b8   : > { %1651 = vmatmul.mubr.msk.f32.vlgmr.msra.gmra.mrb[8].mxu0 %vm675_vm2, %v1632_v5 }
 0x57a   : > { %v1087_v8 = vpop.f32.mrb[6].mxu1 }
 0x57b   : > { %v1637_v9 = vpop.f32.mrb[7].mxu1 }
 0x58b   : > { %v1307_v10 = vpop.f32.mrb[8].mxu0 }
 0x58c   : > { %v1715_v11 = vadd.f32 %v1307_v10, %v1087_v8  ;;  %v1652_v12 = vpop.f32.mrb[9].mxu0 }
 0x58e   : > { %1312 = vst.msk [vmem:[%s380_s11] sm:$0xff] %vm386_vm1, %v1715_v11 }
 0x58f   : > { %2100 = shalt.err (!%p2097_p3)
}
 0x590   : > { %s2101_s29 = scalar_lea.hbm %s2595_s17, 128  ;;  %s2105_s14 = scalar_lea.hbm %s2647_s7, 256 }
 0x591   : > { %p2102_p4 = scmp.ne.s32.totalorder %s2595_s17, %s2101_s29  ;;  %p2106_p8 = scmp.lt.u32.totalorder %s2595_s17, %s2647_s7 }
 0x592   : > { %p2107_p5 = scmp.lt.u32.totalorder %s2105_s14, %s2101_s29  ;;  %p2109_p6 = scmp.lt.u32.totalorder %s2101_s29, %s2595_s17 }
 0x593   : > { %p2103_p10 = pnand %p2102_p4, %p2669_p9 }
 0x594   : > { %p2108_p7 = por %p2107_p5, %p2106_p8 }
 0x595   : > { %p2104_p11 = pneg %p2103_p10 }
 0x596   : > { %p2110_p12 = por %p2109_p6, %p2108_p7 }
 0x598   : > { %p2111_p1 = pnand %p2110_p12, %p2104_p11 }
 0x59a   : > { %2114 = shalt.err (!%p2111_p1)
}
 0x59b   : > { %1746 = dma.vmem_to_hbm [thread:$0]  (%p2669_p9), %s2597_s13, 128, %s2595_s17, %s1314_s18  }
 0x59c PF: > { %s1339_s28 = sand.u32 1, %s2153_s24   ;;  %p2670_p13 = scmp.ne.s32.totalorder %s2658_s16, 0 }
 0x59d   : > { %p2671_p0 = scmp.ge.s32.totalorder %s2165_s27, 2  ;;  %s1340_s21 = scalar_lea.sflag [#allocation4], %s1339_s28 }
 0x59f   : > { %p1772_p2 = pnand %p2671_p0, %p2670_p13 }
 0x5a1   : > { %2148 = dma.done.wait (!%p1772_p2), %s1340_s21, 128  }
 0x5a2   : > { %2150 = vsyncadd (!%p1772_p2), %s1340_s21, 4294967168  ;;  %p23_p3 = scmp.ge.s32.totalorder %s2417_s19, 4   ;;  %s2672_s24 = smov %s2157_s25 }
 0x5a3   : > { %s2673_s25 = smov %s2161_s26  ;;  %s2674_s26 = smov %s2428_s12 }
 0x5a4   : > { %s2675_s27 = smov %s2417_s19  ;;  %25 = sbr.rel (!%p23_p3) target bundleno = 8 (0x8), region = 117 }
 0x5ab   :  { %1345 = vsyncpa [#allocation3], 1 }
 0x5ac   :  { %1347 = vsyncpa [#allocation3 + $0x1], 1 }
 0x5ad   :  { %1348 = vsyncpa [#allocation6], 1 }
 0x5ae   :  { %1349 = vsyncpa [#allocation9], 1 }
 0x5af   :  { %1350 = vsyncpa [#allocation12], 1 }
 0x5b0   :  { %1351 = vsyncpa [#allocation4], 1 }
 0x5b1   :  { %1353 = vsyncpa [#allocation4 + $0x1], 1 }

</bundles_post_ra>
